<compile_context>
chip_gen: v7x
topology: tpu7x:2x2x1
jax: 0.10.0
libtpu: 0.0.40
codegen_flags: <defaults>
</compile_context>

<pallas_src>
import functools

import jax
import jax.numpy as jnp
from jax.experimental import pallas as pl
from jax.experimental.pallas import tpu as pltpu

LEAKY = 0.1
EPS = 1e-5


# ------------- fused implicit-im2col conv + BatchNorm partial statistics -------------

def _conv_bnstats_kernel(*refs, k, ow, stride):
    # refs = (x_row_ref_0, ..., x_row_ref_{k-1}, w_ref, o_ref, sum_ref, sq_ref)
    x_refs = refs[:k]                                   # each (1, 1, Wp, Cin) bf16
    w_ref, o_ref, sum_ref, sq_ref = refs[k:]
    span = (ow - 1) * stride + 1
    acc = None
    for di in range(k):
        row = x_refs[di][0, 0]                          # (Wp, Cin) bf16
        for dj in range(k):
            a = row[dj:dj + span:stride]                # (OW, Cin) static slice
            p = jnp.dot(a, w_ref[di, dj],               # MXU, f32 accumulation
                        preferred_element_type=jnp.float32)
            acc = p if acc is None else acc + p         # no zero-init / RMW
    tco = acc.shape[-1]
    # conv output stored bf16; BN stats taken from the f32 accumulator.
    o_ref[...] = acc.astype(o_ref.dtype).reshape(1, 1, ow, tco)
    sum_ref[...] = jnp.sum(acc, axis=0).reshape(1, 1, 1, tco)
    sq_ref[...] = jnp.sum(acc * acc, axis=0).reshape(1, 1, 1, tco)


def _pick_cout_tile(cout):
    for c in (256, 128):
        if cout % c == 0:
            return c
    return cout                                         # full-extent block (legal)


def conv_bnstats(xp, wr, *, stride, oh, ow):
    """xp: (N, Hp, Wp, Cin) bf16 padded NHWC. wr: (k, k, Cin, Cout) bf16.
    Returns: conv (N, OH, OW, Cout) bf16, partial sum/sumsq (N, OH, 1, Cout) f32."""
    n, hp, wp, cin = xp.shape
    k = wr.shape[0]
    cout = wr.shape[-1]
    tco = _pick_cout_tile(cout)
    grid = (cout // tco, n, oh)                         # all axes independent

    def act_spec(di):
        def imap(j, b, r):
            return (b, r * stride + di, 0, 0)           # input row for kernel row di
        return pl.BlockSpec((1, 1, wp, cin), imap)

    kernel = functools.partial(_conv_bnstats_kernel, k=k, ow=ow, stride=stride)
    return pl.pallas_call(
        kernel,
        grid=grid,
        in_specs=[act_spec(di) for di in range(k)] + [
            pl.BlockSpec((k, k, cin, tco), lambda j, b, r: (0, 0, 0, j))],
        out_specs=(
            pl.BlockSpec((1, 1, ow, tco), lambda j, b, r: (b, r, 0, j)),
            pl.BlockSpec((1, 1, 1, tco), lambda j, b, r: (b, r, 0, j)),
            pl.BlockSpec((1, 1, 1, tco), lambda j, b, r: (b, r, 0, j)),
        ),
        out_shape=(
            jax.ShapeDtypeStruct((n, oh, ow, cout), jnp.bfloat16),
            jax.ShapeDtypeStruct((n, oh, 1, cout), jnp.float32),
            jax.ShapeDtypeStruct((n, oh, 1, cout), jnp.float32),
        ),
        compiler_params=pltpu.CompilerParams(
            dimension_semantics=("parallel", "parallel", "parallel"),
            vmem_limit_bytes=32 * 1024 * 1024),
    )(*([xp] * k), wr)


# -------------------- lane-dense BN scale/shift + LeakyReLU ---------------------

def _bn_leaky_kernel(x_ref, scale_ref, shift_ref, o_ref):
    y = x_ref[...].astype(jnp.float32) * scale_ref[...] + shift_ref[...]
    o_ref[...] = jnp.where(y > 0, y, LEAKY * y)


def _pick_row_tile(m, c):
    per_row = c * (2 + 4) * 2                           # bf16 in + f32 out, x2 buffers
    cap = max(8, (8 << 20) // per_row)
    best = None
    t = 8
    while t <= min(m, cap):
        if m % t == 0 and m // t >= 4:                  # >=4 blocks keeps v7x's 2 TCs busy
            best = t
        t += 8
    if best is None:
        t = 8
        while t <= m:
            if m % t == 0:
                best = t
                break
            t += 8
    return best if best is not None else m              # full-extent fallback


def bn_leaky_apply(x2d, scale_row, shift_row):
    """x2d: (M2, C2) bf16 with C2 = OW*Cout (lane-dense). scale/shift: (1, C2) f32."""
    m2, c2 = x2d.shape
    tr = _pick_row_tile(m2, c2)
    return pl.pallas_call(
        _bn_leaky_kernel,
        grid=(m2 // tr,),
        in_specs=[pl.BlockSpec((tr, c2), lambda i: (i, 0)),
                  pl.BlockSpec((1, c2), lambda i: (0, 0)),
                  pl.BlockSpec((1, c2), lambda i: (0, 0))],
        out_specs=pl.BlockSpec((tr, c2), lambda i: (i, 0)),
        out_shape=jax.ShapeDtypeStruct((m2, c2), jnp.float32),
        compiler_params=pltpu.CompilerParams(dimension_semantics=("parallel",)),
    )(x2d, scale_row, shift_row)


# ------------------------------- CNNBlock forward -------------------------------

def cnn_block_forward(x_nchw, w, gamma, beta, *, stride, padding):
    """LeakyReLU(0.1)(BatchNorm2d(Conv2d(x, w, bias=False))) with batch statistics."""
    n, cin, h, wdt = x_nchw.shape
    cout, cin2, kh, kw = w.shape
    assert cin2 == cin and kh == kw
    k = kh

    # Layout conversion only at the module boundary.
    x = jnp.transpose(x_nchw, (0, 2, 3, 1)).astype(jnp.bfloat16)      # NCHW -> NHWC bf16
    xp = (jnp.pad(x, ((0, 0), (padding, padding), (padding, padding), (0, 0)))
          if padding else x)
    hp, wp = h + 2 * padding, wdt + 2 * padding
    oh = (hp - k) // stride + 1
    ow = (wp - k) // stride + 1
    assert oh > 0 and ow > 0
    wr = jnp.transpose(w, (2, 3, 1, 0)).astype(jnp.bfloat16)          # (k, k, Cin, Cout)

    conv, psum, psq = conv_bnstats(xp, wr, stride=stride, oh=oh, ow=ow)

    m = n * oh * ow
    mean = jnp.sum(psum, axis=(0, 1, 2)) / m
    var = jnp.maximum(jnp.sum(psq, axis=(0, 1, 2)) / m - mean * mean, 0.0)  # biased var
    scale = gamma / jnp.sqrt(var + EPS)
    shift = beta - mean * scale

    # Lane-dense elementwise pass: last dim is OW*Cout (>=128) instead of Cout.
    x2d = conv.reshape(n * oh, ow * cout)
    y2d = bn_leaky_apply(x2d,
                         jnp.tile(scale, ow).reshape(1, ow * cout),
                         jnp.tile(shift, ow).reshape(1, ow * cout))
    y = y2d.reshape(n, oh, ow, cout)
    return jnp.transpose(y, (0, 3, 1, 2))                             # back to NCHW


# --------------------------- pure-JAX reference check ---------------------------

def cnn_block_reference(x_nchw, w, gamma, beta, *, stride, padding):
    x = jnp.transpose(x_nchw.astype(jnp.float32), (0, 2, 3, 1))
    w_hwio = jnp.transpose(w, (2, 3, 1, 0)).astype(jnp.float32)
    conv = jax.lax.conv_general_dilated(
        x, w_hwio, window_strides=(stride, stride),
        padding=[(padding, padding), (padding, padding)],
        dimension_numbers=('NHWC', 'HWIO', 'NHWC'))
    mean = jnp.mean(conv, axis=(0, 1, 2))
    var = jnp.mean((conv - mean) ** 2, axis=(0, 1, 2))
    y = (conv - mean) / jnp.sqrt(var + EPS) * gamma + beta
    y = jnp.where(y > 0, y, LEAKY * y)
    return jnp.transpose(y, (0, 3, 1, 2))


if __name__ == "__main__":
    key = jax.random.PRNGKey(0)
    kx, kw_, kg, kb = jax.random.split(key, 4)

    # CNNBlock(in_channels=4, out_channels=32, kernel_size=3, stride=1, padding=1)
    N, Cin, H, W = 2, 4, 16, 16
    Cout, K, S, P = 32, 3, 1, 1

    x = jax.random.normal(kx, (N, Cin, H, W), jnp.float32)            # NCHW like torch
    w = jax.random.normal(kw_, (Cout, Cin, K, K), jnp.float32) / jnp.sqrt(Cin * K * K)
    gamma = 1.0 + 0.1 * jax.random.normal(kg, (Cout,), jnp.float32)
    beta = 0.1 * jax.random.normal(kb, (Cout,), jnp.float32)

    fwd = jax.jit(functools.partial(cnn_block_forward, stride=S, padding=P))
    out = jax.block_until_ready(fwd(x, w, gamma, beta))

    assert out.shape == (N, Cout, H, W), out.shape
    assert bool(jnp.all(jnp.isfinite(out)))

    # Loose tolerance: operands and the stored conv intermediate are bf16
    # (accumulation f32); post-BN values are O(1), so a structural bug would
    # show up as an O(1) error.
    ref = cnn_block_reference(x, w, gamma, beta, stride=S, padding=P)
    err = float(jnp.max(jnp.abs(out - ref)))
    assert err < 1e-1, f"max abs err vs reference = {err}"

    print("KERNEL_OK")
</pallas_src>

<mosaic_0001>
module attributes {stable_mosaic.version = 11 : i64} {
  func.func @_conv_bnstats_kernel(%arg0: i32, %arg1: i32, %arg2: i32, %arg3: memref<1x1x18x4xbf16, #tpu.memory_space<vmem>>, %arg4: memref<1x1x18x4xbf16, #tpu.memory_space<vmem>>, %arg5: memref<1x1x18x4xbf16, #tpu.memory_space<vmem>>, %arg6: memref<3x3x4x32xbf16, #tpu.memory_space<vmem>>, %arg7: memref<1x1x16x32xbf16, #tpu.memory_space<vmem>>, %arg8: memref<1x1x1x32xf32, #tpu.memory_space<vmem>>, %arg9: memref<1x1x1x32xf32, #tpu.memory_space<vmem>>) attributes {dimension_semantics = [#tpu.dimension_semantics<parallel>, #tpu.dimension_semantics<parallel>, #tpu.dimension_semantics<parallel>], iteration_bounds = array<i64: 1, 2, 16>, scalar_prefetch = 0 : i64, scratch_operands = 0 : i64, tpu.core_type = #tpu.core_type<tc>, window_params = [{transform_indices = @transform_0, window_bounds = array<i64: 1, 1, 18, 4>}, {transform_indices = @transform_1, window_bounds = array<i64: 1, 1, 18, 4>}, {transform_indices = @transform_2, window_bounds = array<i64: 1, 1, 18, 4>}, {transform_indices = @transform_3, window_bounds = array<i64: 3, 3, 4, 32>}, {transform_indices = @transform_4, window_bounds = array<i64: 1, 1, 16, 32>}, {transform_indices = @transform_5, window_bounds = array<i64: 1, 1, 1, 32>}, {transform_indices = @transform_6, window_bounds = array<i64: 1, 1, 1, 32>}]} {
    %c0 = arith.constant 0 : index
    %c0_0 = arith.constant 0 : index
    %c0_1 = arith.constant 0 : index
    %c0_2 = arith.constant 0 : index
    %0 = vector.load %arg3[%c0, %c0_0, %c0_1, %c0_2] : memref<1x1x18x4xbf16, #tpu.memory_space<vmem>>, vector<1x1x18x4xbf16>
    %1 = vector.shape_cast %0 : vector<1x1x18x4xbf16> to vector<18x4xbf16>
    %2 = vector.extract_strided_slice %1 {offsets = [0, 0], sizes = [16, 4], strides = [1, 1]} : vector<18x4xbf16> to vector<16x4xbf16>
    %c0_3 = arith.constant 0 : index
    %c0_4 = arith.constant 0 : index
    %c0_5 = arith.constant 0 : index
    %c0_6 = arith.constant 0 : index
    %3 = vector.load %arg6[%c0_3, %c0_4, %c0_5, %c0_6] : memref<3x3x4x32xbf16, #tpu.memory_space<vmem>>, vector<1x1x4x32xbf16>
    %4 = vector.shape_cast %3 : vector<1x1x4x32xbf16> to vector<4x32xbf16>
    %cst = arith.constant dense<0.000000e+00> : vector<16x32xf32>
    %5 = tpu.matmul %2, %4, %cst {dimension_numbers = #tpu.dot_dimension_numbers<[1], [0], [0], [1], [0, 0, 1, 1], [], []>} : vector<16x4xbf16>, vector<4x32xbf16>, vector<16x32xf32> -> vector<16x32xf32>
    %6 = vector.extract_strided_slice %1 {offsets = [1, 0], sizes = [16, 4], strides = [1, 1]} : vector<18x4xbf16> to vector<16x4xbf16>
    %c0_7 = arith.constant 0 : index
    %c1 = arith.constant 1 : index
    %c0_8 = arith.constant 0 : index
    %c0_9 = arith.constant 0 : index
    %7 = vector.load %arg6[%c0_7, %c1, %c0_8, %c0_9] : memref<3x3x4x32xbf16, #tpu.memory_space<vmem>>, vector<1x1x4x32xbf16>
    %8 = vector.shape_cast %7 : vector<1x1x4x32xbf16> to vector<4x32xbf16>
    %cst_10 = arith.constant dense<0.000000e+00> : vector<16x32xf32>
    %9 = tpu.matmul %6, %8, %cst_10 {dimension_numbers = #tpu.dot_dimension_numbers<[1], [0], [0], [1], [0, 0, 1, 1], [], []>} : vector<16x4xbf16>, vector<4x32xbf16>, vector<16x32xf32> -> vector<16x32xf32>
    %10 = arith.addf %5, %9 : vector<16x32xf32>
    %11 = vector.extract_strided_slice %1 {offsets = [2, 0], sizes = [16, 4], strides = [1, 1]} : vector<18x4xbf16> to vector<16x4xbf16>
    %c0_11 = arith.constant 0 : index
    %c2 = arith.constant 2 : index
    %c0_12 = arith.constant 0 : index
    %c0_13 = arith.constant 0 : index
    %12 = vector.load %arg6[%c0_11, %c2, %c0_12, %c0_13] : memref<3x3x4x32xbf16, #tpu.memory_space<vmem>>, vector<1x1x4x32xbf16>
    %13 = vector.shape_cast %12 : vector<1x1x4x32xbf16> to vector<4x32xbf16>
    %cst_14 = arith.constant dense<0.000000e+00> : vector<16x32xf32>
    %14 = tpu.matmul %11, %13, %cst_14 {dimension_numbers = #tpu.dot_dimension_numbers<[1], [0], [0], [1], [0, 0, 1, 1], [], []>} : vector<16x4xbf16>, vector<4x32xbf16>, vector<16x32xf32> -> vector<16x32xf32>
    %15 = arith.addf %10, %14 : vector<16x32xf32>
    %c0_15 = arith.constant 0 : index
    %c0_16 = arith.constant 0 : index
    %c0_17 = arith.constant 0 : index
    %c0_18 = arith.constant 0 : index
    %16 = vector.load %arg4[%c0_15, %c0_16, %c0_17, %c0_18] : memref<1x1x18x4xbf16, #tpu.memory_space<vmem>>, vector<1x1x18x4xbf16>
    %17 = vector.shape_cast %16 : vector<1x1x18x4xbf16> to vector<18x4xbf16>
    %18 = vector.extract_strided_slice %17 {offsets = [0, 0], sizes = [16, 4], strides = [1, 1]} : vector<18x4xbf16> to vector<16x4xbf16>
    %c1_19 = arith.constant 1 : index
    %c0_20 = arith.constant 0 : index
    %c0_21 = arith.constant 0 : index
    %c0_22 = arith.constant 0 : index
    %19 = vector.load %arg6[%c1_19, %c0_20, %c0_21, %c0_22] : memref<3x3x4x32xbf16, #tpu.memory_space<vmem>>, vector<1x1x4x32xbf16>
    %20 = vector.shape_cast %19 : vector<1x1x4x32xbf16> to vector<4x32xbf16>
    %cst_23 = arith.constant dense<0.000000e+00> : vector<16x32xf32>
    %21 = tpu.matmul %18, %20, %cst_23 {dimension_numbers = #tpu.dot_dimension_numbers<[1], [0], [0], [1], [0, 0, 1, 1], [], []>} : vector<16x4xbf16>, vector<4x32xbf16>, vector<16x32xf32> -> vector<16x32xf32>
    %22 = arith.addf %15, %21 : vector<16x32xf32>
    %23 = vector.extract_strided_slice %17 {offsets = [1, 0], sizes = [16, 4], strides = [1, 1]} : vector<18x4xbf16> to vector<16x4xbf16>
    %c1_24 = arith.constant 1 : index
    %c1_25 = arith.constant 1 : index
    %c0_26 = arith.constant 0 : index
    %c0_27 = arith.constant 0 : index
    %24 = vector.load %arg6[%c1_24, %c1_25, %c0_26, %c0_27] : memref<3x3x4x32xbf16, #tpu.memory_space<vmem>>, vector<1x1x4x32xbf16>
    %25 = vector.shape_cast %24 : vector<1x1x4x32xbf16> to vector<4x32xbf16>
    %cst_28 = arith.constant dense<0.000000e+00> : vector<16x32xf32>
    %26 = tpu.matmul %23, %25, %cst_28 {dimension_numbers = #tpu.dot_dimension_numbers<[1], [0], [0], [1], [0, 0, 1, 1], [], []>} : vector<16x4xbf16>, vector<4x32xbf16>, vector<16x32xf32> -> vector<16x32xf32>
    %27 = arith.addf %22, %26 : vector<16x32xf32>
    %28 = vector.extract_strided_slice %17 {offsets = [2, 0], sizes = [16, 4], strides = [1, 1]} : vector<18x4xbf16> to vector<16x4xbf16>
    %c1_29 = arith.constant 1 : index
    %c2_30 = arith.constant 2 : index
    %c0_31 = arith.constant 0 : index
    %c0_32 = arith.constant 0 : index
    %29 = vector.load %arg6[%c1_29, %c2_30, %c0_31, %c0_32] : memref<3x3x4x32xbf16, #tpu.memory_space<vmem>>, vector<1x1x4x32xbf16>
    %30 = vector.shape_cast %29 : vector<1x1x4x32xbf16> to vector<4x32xbf16>
    %cst_33 = arith.constant dense<0.000000e+00> : vector<16x32xf32>
    %31 = tpu.matmul %28, %30, %cst_33 {dimension_numbers = #tpu.dot_dimension_numbers<[1], [0], [0], [1], [0, 0, 1, 1], [], []>} : vector<16x4xbf16>, vector<4x32xbf16>, vector<16x32xf32> -> vector<16x32xf32>
    %32 = arith.addf %27, %31 : vector<16x32xf32>
    %c0_34 = arith.constant 0 : index
    %c0_35 = arith.constant 0 : index
    %c0_36 = arith.constant 0 : index
    %c0_37 = arith.constant 0 : index
    %33 = vector.load %arg5[%c0_34, %c0_35, %c0_36, %c0_37] : memref<1x1x18x4xbf16, #tpu.memory_space<vmem>>, vector<1x1x18x4xbf16>
    %34 = vector.shape_cast %33 : vector<1x1x18x4xbf16> to vector<18x4xbf16>
    %35 = vector.extract_strided_slice %34 {offsets = [0, 0], sizes = [16, 4], strides = [1, 1]} : vector<18x4xbf16> to vector<16x4xbf16>
    %c2_38 = arith.constant 2 : index
    %c0_39 = arith.constant 0 : index
    %c0_40 = arith.constant 0 : index
    %c0_41 = arith.constant 0 : index
    %36 = vector.load %arg6[%c2_38, %c0_39, %c0_40, %c0_41] : memref<3x3x4x32xbf16, #tpu.memory_space<vmem>>, vector<1x1x4x32xbf16>
    %37 = vector.shape_cast %36 : vector<1x1x4x32xbf16> to vector<4x32xbf16>
    %cst_42 = arith.constant dense<0.000000e+00> : vector<16x32xf32>
    %38 = tpu.matmul %35, %37, %cst_42 {dimension_numbers = #tpu.dot_dimension_numbers<[1], [0], [0], [1], [0, 0, 1, 1], [], []>} : vector<16x4xbf16>, vector<4x32xbf16>, vector<16x32xf32> -> vector<16x32xf32>
    %39 = arith.addf %32, %38 : vector<16x32xf32>
    %40 = vector.extract_strided_slice %34 {offsets = [1, 0], sizes = [16, 4], strides = [1, 1]} : vector<18x4xbf16> to vector<16x4xbf16>
    %c2_43 = arith.constant 2 : index
    %c1_44 = arith.constant 1 : index
    %c0_45 = arith.constant 0 : index
    %c0_46 = arith.constant 0 : index
    %41 = vector.load %arg6[%c2_43, %c1_44, %c0_45, %c0_46] : memref<3x3x4x32xbf16, #tpu.memory_space<vmem>>, vector<1x1x4x32xbf16>
    %42 = vector.shape_cast %41 : vector<1x1x4x32xbf16> to vector<4x32xbf16>
    %cst_47 = arith.constant dense<0.000000e+00> : vector<16x32xf32>
    %43 = tpu.matmul %40, %42, %cst_47 {dimension_numbers = #tpu.dot_dimension_numbers<[1], [0], [0], [1], [0, 0, 1, 1], [], []>} : vector<16x4xbf16>, vector<4x32xbf16>, vector<16x32xf32> -> vector<16x32xf32>
    %44 = arith.addf %39, %43 : vector<16x32xf32>
    %45 = vector.extract_strided_slice %34 {offsets = [2, 0], sizes = [16, 4], strides = [1, 1]} : vector<18x4xbf16> to vector<16x4xbf16>
    %c2_48 = arith.constant 2 : index
    %c2_49 = arith.constant 2 : index
    %c0_50 = arith.constant 0 : index
    %c0_51 = arith.constant 0 : index
    %46 = vector.load %arg6[%c2_48, %c2_49, %c0_50, %c0_51] : memref<3x3x4x32xbf16, #tpu.memory_space<vmem>>, vector<1x1x4x32xbf16>
    %47 = vector.shape_cast %46 : vector<1x1x4x32xbf16> to vector<4x32xbf16>
    %cst_52 = arith.constant dense<0.000000e+00> : vector<16x32xf32>
    %48 = tpu.matmul %45, %47, %cst_52 {dimension_numbers = #tpu.dot_dimension_numbers<[1], [0], [0], [1], [0, 0, 1, 1], [], []>} : vector<16x4xbf16>, vector<4x32xbf16>, vector<16x32xf32> -> vector<16x32xf32>
    %49 = arith.addf %44, %48 : vector<16x32xf32>
    %50 = arith.truncf %49 : vector<16x32xf32> to vector<16x32xbf16>
    %51 = vector.shape_cast %50 : vector<16x32xbf16> to vector<1x1x16x32xbf16>
    %c0_53 = arith.constant 0 : index
    %c0_54 = arith.constant 0 : index
    %c0_55 = arith.constant 0 : index
    %c0_56 = arith.constant 0 : index
    %52 = vector.load %arg7[%c0_53, %c0_54, %c0_55, %c0_56] : memref<1x1x16x32xbf16, #tpu.memory_space<vmem>>, vector<1x1x16x32xbf16>
    tpu.vector_store %arg7[%c0_53, %c0_54, %c0_55, %c0_56], %51 {strides = array<i32>} : memref<1x1x16x32xbf16, #tpu.memory_space<vmem>>, vector<1x1x16x32xbf16>,
    %cst_57 = arith.constant dense<0.000000e+00> : vector<32xf32>
    %53 = vector.multi_reduction <add>, %49, %cst_57 [0] : vector<16x32xf32> to vector<32xf32>
    %54 = vector.shape_cast %53 : vector<32xf32> to vector<1x1x1x32xf32>
    %c0_58 = arith.constant 0 : index
    %c0_59 = arith.constant 0 : index
    %c0_60 = arith.constant 0 : index
    %c0_61 = arith.constant 0 : index
    %55 = vector.load %arg8[%c0_58, %c0_59, %c0_60, %c0_61] : memref<1x1x1x32xf32, #tpu.memory_space<vmem>>, vector<1x1x1x32xf32>
    tpu.vector_store %arg8[%c0_58, %c0_59, %c0_60, %c0_61], %54 {strides = array<i32>} : memref<1x1x1x32xf32, #tpu.memory_space<vmem>>, vector<1x1x1x32xf32>,
    %56 = arith.mulf %49, %49 : vector<16x32xf32>
    %cst_62 = arith.constant dense<0.000000e+00> : vector<32xf32>
    %57 = vector.multi_reduction <add>, %56, %cst_62 [0] : vector<16x32xf32> to vector<32xf32>
    %58 = vector.shape_cast %57 : vector<32xf32> to vector<1x1x1x32xf32>
    %c0_63 = arith.constant 0 : index
    %c0_64 = arith.constant 0 : index
    %c0_65 = arith.constant 0 : index
    %c0_66 = arith.constant 0 : index
    %59 = vector.load %arg9[%c0_63, %c0_64, %c0_65, %c0_66] : memref<1x1x1x32xf32, #tpu.memory_space<vmem>>, vector<1x1x1x32xf32>
    tpu.vector_store %arg9[%c0_63, %c0_64, %c0_65, %c0_66], %58 {strides = array<i32>} : memref<1x1x1x32xf32, #tpu.memory_space<vmem>>, vector<1x1x1x32xf32>,
    return
  }
  func.func @transform_0(%arg0: i32, %arg1: i32, %arg2: i32) -> (i32, i32, i32, i32) {
    %c1_i32 = arith.constant 1 : i32
    %0 = arith.muli %arg2, %c1_i32 : i32
    %c0_i32 = arith.constant 0 : i32
    %1 = arith.addi %0, %c0_i32 : i32
    %c0_i32_0 = arith.constant 0 : i32
    %c0_i32_1 = arith.constant 0 : i32
    %c0_i32_2 = arith.constant 0 : i32
    return %arg1, %1, %c0_i32_0, %c0_i32_1 : i32, i32, i32, i32
  }
  func.func @transform_1(%arg0: i32, %arg1: i32, %arg2: i32) -> (i32, i32, i32, i32) {
    %c1_i32 = arith.constant 1 : i32
    %0 = arith.muli %arg2, %c1_i32 : i32
    %c1_i32_0 = arith.constant 1 : i32
    %1 = arith.addi %0, %c1_i32_0 : i32
    %c0_i32 = arith.constant 0 : i32
    %c0_i32_1 = arith.constant 0 : i32
    %c0_i32_2 = arith.constant 0 : i32
    return %arg1, %1, %c0_i32, %c0_i32_1 : i32, i32, i32, i32
  }
  func.func @transform_2(%arg0: i32, %arg1: i32, %arg2: i32) -> (i32, i32, i32, i32) {
    %c1_i32 = arith.constant 1 : i32
    %0 = arith.muli %arg2, %c1_i32 : i32
    %c2_i32 = arith.constant 2 : i32
    %1 = arith.addi %0, %c2_i32 : i32
    %c0_i32 = arith.constant 0 : i32
    %c0_i32_0 = arith.constant 0 : i32
    %c0_i32_1 = arith.constant 0 : i32
    return %arg1, %1, %c0_i32, %c0_i32_0 : i32, i32, i32, i32
  }
  func.func @transform_3(%arg0: i32, %arg1: i32, %arg2: i32) -> (i32, i32, i32, i32) {
    %c0_i32 = arith.constant 0 : i32
    %c0_i32_0 = arith.constant 0 : i32
    %c0_i32_1 = arith.constant 0 : i32
    %c0_i32_2 = arith.constant 0 : i32
    return %c0_i32, %c0_i32_0, %c0_i32_1, %arg0 : i32, i32, i32, i32
  }
  func.func @transform_4(%arg0: i32, %arg1: i32, %arg2: i32) -> (i32, i32, i32, i32) {
    %c0_i32 = arith.constant 0 : i32
    %c0_i32_0 = arith.constant 0 : i32
    return %arg1, %arg2, %c0_i32, %arg0 : i32, i32, i32, i32
  }
  func.func @transform_5(%arg0: i32, %arg1: i32, %arg2: i32) -> (i32, i32, i32, i32) {
    %c0_i32 = arith.constant 0 : i32
    %c0_i32_0 = arith.constant 0 : i32
    return %arg1, %arg2, %c0_i32, %arg0 : i32, i32, i32, i32
  }
  func.func @transform_6(%arg0: i32, %arg1: i32, %arg2: i32) -> (i32, i32, i32, i32) {
    %c0_i32 = arith.constant 0 : i32
    %c0_i32_0 = arith.constant 0 : i32
    return %arg1, %arg2, %c0_i32, %arg0 : i32, i32, i32, i32
  }
}

module attributes {stable_mosaic.version = 11 : i64} {
  func.func @_bn_leaky_kernel(%arg0: i32, %arg1: memref<8x512xbf16, #tpu.memory_space<vmem>>, %arg2: memref<1x512xf32, #tpu.memory_space<vmem>>, %arg3: memref<1x512xf32, #tpu.memory_space<vmem>>, %arg4: memref<8x512xf32, #tpu.memory_space<vmem>>) attributes {dimension_semantics = [#tpu.dimension_semantics<parallel>], iteration_bounds = array<i64: 4>, scalar_prefetch = 0 : i64, scratch_operands = 0 : i64, tpu.core_type = #tpu.core_type<tc>, window_params = [{transform_indices = @transform_0, window_bounds = array<i64: 8, 512>}, {pipeline_mode = #tpu.pipeline_mode<synchronous>, transform_indices = @transform_1, window_bounds = array<i64: 1, 512>}, {pipeline_mode = #tpu.pipeline_mode<synchronous>, transform_indices = @transform_2, window_bounds = array<i64: 1, 512>}, {transform_indices = @transform_3, window_bounds = array<i64: 8, 512>}]} {
    %c0 = arith.constant 0 : index
    %c0_0 = arith.constant 0 : index
    %0 = vector.load %arg1[%c0, %c0_0] : memref<8x512xbf16, #tpu.memory_space<vmem>>, vector<8x512xbf16>
    %1 = arith.extf %0 : vector<8x512xbf16> to vector<8x512xf32>
    %c0_1 = arith.constant 0 : index
    %c0_2 = arith.constant 0 : index
    %2 = vector.load %arg2[%c0_1, %c0_2] : memref<1x512xf32, #tpu.memory_space<vmem>>, vector<1x512xf32>
    %3 = vector.broadcast %2 : vector<1x512xf32> to vector<8x512xf32>
    %4 = arith.mulf %1, %3 : vector<8x512xf32>
    %c0_3 = arith.constant 0 : index
    %c0_4 = arith.constant 0 : index
    %5 = vector.load %arg3[%c0_3, %c0_4] : memref<1x512xf32, #tpu.memory_space<vmem>>, vector<1x512xf32>
    %6 = vector.broadcast %5 : vector<1x512xf32> to vector<8x512xf32>
    %7 = arith.addf %4, %6 : vector<8x512xf32>
    %cst = arith.constant 0.000000e+00 : f32
    %8 = vector.broadcast %cst : f32 to vector<8x512xf32>
    %9 = arith.cmpf ogt, %7, %8 : vector<8x512xf32>
    %cst_5 = arith.constant 1.000000e-01 : f32
    %10 = vector.broadcast %cst_5 : f32 to vector<8x512xf32>
    %11 = arith.mulf %10, %7 : vector<8x512xf32>
    %12 = arith.select %9, %7, %11 : vector<8x512xi1>, vector<8x512xf32>
    %c0_6 = arith.constant 0 : index
    %c0_7 = arith.constant 0 : index
    %13 = vector.load %arg4[%c0_6, %c0_7] : memref<8x512xf32, #tpu.memory_space<vmem>>, vector<8x512xf32>
    tpu.vector_store %arg4[%c0_6, %c0_7], %12 {strides = array<i32>} : memref<8x512xf32, #tpu.memory_space<vmem>>, vector<8x512xf32>,
    return
  }
  func.func @transform_0(%arg0: i32) -> (i32, i32) {
    %c0_i32 = arith.constant 0 : i32
    %c0_i32_0 = arith.constant 0 : i32
    return %arg0, %c0_i32 : i32, i32
  }
  func.func @transform_1(%arg0: i32) -> (i32, i32) {
    %c0_i32 = arith.constant 0 : i32
    %c0_i32_0 = arith.constant 0 : i32
    %c0_i32_1 = arith.constant 0 : i32
    return %c0_i32, %c0_i32_0 : i32, i32
  }
  func.func @transform_2(%arg0: i32) -> (i32, i32) {
    %c0_i32 = arith.constant 0 : i32
    %c0_i32_0 = arith.constant 0 : i32
    %c0_i32_1 = arith.constant 0 : i32
    return %c0_i32, %c0_i32_0 : i32, i32
  }
  func.func @transform_3(%arg0: i32) -> (i32, i32) {
    %c0_i32 = arith.constant 0 : i32
    %c0_i32_0 = arith.constant 0 : i32
    return %arg0, %c0_i32 : i32, i32
  }
}

</mosaic_0001>

<bundles_post_ra>
// kernel: tile.18
= control target key start
LH: loop header
LB: loop body
LE: loop exit
PB: predicated region body
PF: predicated region fallthrough
CT: control target
= control target key end

     0   :  { %s28_s0 = inlined_call_operand.vmem [shape: f32[32], index: 0, kind: input, shape index: {}]   ;;  %s29_s1 = inlined_call_operand.vmem [shape: f32[16,32], index: 1, kind: output, shape index: {}]  }
   0x1   :  { %v4_v0 = vld [vmem:[%s28_s0] ss:$0 sm:$0xff] }
   0x2   :  { %5 = vst [vmem:[%s29_s1] sm:$0xff] %v4_v0  ;;  %8 = vst [vmem:[%s29_s1 + $0x8] sm:$0xff] %v4_v0 }

// kernel: tile.19
= control target key start
LH: loop header
LB: loop body
LE: loop exit
PB: predicated region body
PF: predicated region fallthrough
CT: control target
= control target key end

     0   :  { %s57_s8 = smov 96   ;;  %vm3_vm0 = vcmask 261120   ;;  %s59_s15 = smov 64   ;;  %vm9_vm1 = vcmask 1048320   ;;  %vm15_vm2 = vcmask 785920   ;;  %vm21_vm3 = vcmask 523520   ;;  %s94_s0 = inlined_call_operand.vmem [shape: f32[16,32], index: 0, kind: input, shape index: {}]   ;;  %s95_s1 = inlined_call_operand.vmem [shape: f32[1,512], index: 1, kind: output, shape index: {}]  }
   0x1   :  { %v48_v0 = vld [vmem:[%s94_s0 + $0x3] ss:$4 sm:$0xf]   ;;  %v49_v1 = vld [vmem:[%s94_s0 + $0x2] ss:$4 sm:$0xf]  }
   0x2   :  { %7 = vrot.lane.b32.xlu0 %v48_v0, %s57_s8  ;;  %v50_v2 = vld [vmem:[%s94_s0 + $0x1] ss:$4 sm:$0xf]   ;;  %v2_v3 = vld [vmem:[%s94_s0] ss:$4 sm:$0xf]  }
   0x3   :  { %s58_s0 = smov 32   ;;  %4 = vst.msk [vmem:[#allocation0] ss:$8 sm:$0xf] %vm3_vm0, %v2_v3  }
   0x4   :  { %19 = vrot.lane.b32.xlu1 %v50_v2, %s58_s0 }
   0x6   :  { %13 = vrot.lane.b32.xlu0 %v49_v1, %s59_s15 }
  0x74   :  { %v8_v4 = vpop.permute.xlu0 %7  }
  0x75   :  { %10 = vst.msk [vmem:[#allocation0] ss:$8 sm:$0xf] %vm9_vm1, %v8_v4  }
  0x76   :  { %v20_v5 = vpop.permute.xlu1 %19  }
  0x78   :  { %v14_v6 = vpop.permute.xlu0 %13  }
  0x79   :  { %16 = vst.msk [vmem:[#allocation0] ss:$8 sm:$0xf] %vm15_vm2, %v14_v6  }
  0x7a   :  { %22 = vst.msk [vmem:[#allocation0] ss:$8 sm:$0xf] %vm21_vm3, %v20_v5  }
  0x81   :  { %v26_v7 = vld [vmem:[#allocation0] sm:$0x1]  ;;  %v30_v8 = vld [vmem:[#allocation0 + $0x8] sm:$0x1]  ;;  %v35_v9 = vld [vmem:[#allocation0 + $0x10] sm:$0x1] }
  0x82   :  { %28 = vst [vmem:[%s95_s1] sm:$0x1] %v26_v7  ;;  %51 = vst [vmem:[%s95_s1 + $0x1] sm:$0x1] %v30_v8  ;;  %v41_v10 = vld [vmem:[#allocation0 + $0x18] sm:$0x1] }
  0x83   :  { %52 = vst [vmem:[%s95_s1 + $0x2] sm:$0x1] %v35_v9  ;;  %53 = vst [vmem:[%s95_s1 + $0x3] sm:$0x1] %v41_v10 }

// kernel: cnn_block_forward.3
= control target key start
LH: loop header
LB: loop body
LE: loop exit
PB: predicated region body
PF: predicated region fallthrough
CT: control target
= control target key end

     0   :  { %s349_s12 = smov 0   ;;  %s376_s0 = inlined_call_operand.vmem [shape: bf16[32,512], index: 0, kind: input, shape index: {}]   ;;  %s377_s1 = inlined_call_operand.vmem [shape: f32[1,512], index: 1, kind: input, shape index: {}]   ;;  %s378_s2 = inlined_call_operand.vmem [shape: f32[1,512], index: 2, kind: input, shape index: {}]   ;;  %s379_s3 = inlined_call_operand.vmem [shape: f32[32,512], index: 3, kind: output, shape index: {}]  }
   0x1 LB: > { %s300_s13 = sadd.s32 4294967295, %s327_s12   ;;  %p304_p0 = scmp.ge.s32.totalorder %s327_s12, 1  ;;  %s327_s12 = sphi %s349_s12, %s13_s12  }
   0x2   : > { %p137_p1 = scmp.lt.s32.totalorder %s327_s12, 5 }
   0x4   : > { %p138_p2 = pnand %p304_p0, %p137_p1 }
   0x5   : > { %p161_p3 = scmp.lt.s32.totalorder (!%p138_p2), %s300_s13, 3  ;;  %v179_v0 = vlaneseq (!%p138_p2)  ;;  %v177_v2 = vld [vmem:[%s377_s1] sm:$0xf] (!%p138_p2) }
   0x6   : > { %141 = sbr.rel (%p138_p2) target bundleno = 28 (0x1c), region = 32  ;;  %v203_v3 = vld [vmem:[%s378_s2] sm:$0xf] (!%p138_p2) }
   0x7   : > { %v180_v1 = vshrl.u32 (!%p138_p2), %v179_v0, 7 }
   0x9   : > { %v181_v4 = vsub.s32 (!%p138_p2), 0, %v180_v1  ;;  %v185_v5 = vsub.s32 (!%p138_p2), 1, %v180_v1  ;;  %v189_v6 = vsub.s32 (!%p138_p2), 2, %v180_v1  ;;  %v193_v7 = vsub.s32 (!%p138_p2), 3, %v180_v1 }
   0xb   : > { %v182_v10 = vrot.slane (!%p138_p2), %v177_v2, %v181_v4  ;;  %v208_v11 = vrot.slane (!%p138_p2), %v203_v3, %v181_v4  ;;  %v186_v12 = vrot.slane (!%p138_p2), %v177_v2, %v185_v5  ;;  %v212_v13 = vrot.slane (!%p138_p2), %v203_v3, %v185_v5 }
   0xc   : > { %v190_v17 = vrot.slane (!%p138_p2), %v177_v2, %v189_v6  ;;  %v216_v18 = vrot.slane (!%p138_p2), %v203_v3, %v189_v6  ;;  %v194_v20 = vrot.slane (!%p138_p2), %v177_v2, %v193_v7  ;;  %v220_v21 = vrot.slane (!%p138_p2), %v203_v3, %v193_v7 }
   0xd   : > { %s381_s13 = smov (!%p161_p3, %s300_s13), 3 }
   0xe   : > { %s311_s18 = sshll.u32 %s381_s13, 4  ;;  %s312_s22 = sshll.u32 %s381_s13, 5 }
   0xf   : > { %s165_s21 = scalar_lea.vmem %s376_s0, %s311_s18  ;;  %s170_s25 = scalar_lea.vmem %s379_s3, %s312_s22 }
  0x10   : > { %v171_v8 = vld [vmem:[%s165_s21] sm:$0xff]  ;;  %v172_v9 = vld [vmem:[%s165_s21 + $0x8] sm:$0xff] }
  0x11   : > { %v173_v14 = vunpack.c.l.bf16 %v171_v8  ;;  %v174_v15 = vunpack.c.h.bf16 %v171_v8  ;;  %v175_v16 = vunpack.c.l.bf16 %v172_v9  ;;  %v176_v19 = vunpack.c.h.bf16 %v172_v9 }
  0x13   : > { %v199_v22 = vmul.f32 %v182_v10, %v173_v14  ;;  %v200_v23 = vmul.f32 %v186_v12, %v174_v15  ;;  %v201_v24 = vmul.f32 %v190_v17, %v175_v16  ;;  %v202_v25 = vmul.f32 %v194_v20, %v176_v19 }
  0x15   : > { %v225_v26 = vadd.f32 %v208_v11, %v199_v22  ;;  %v226_v27 = vadd.f32 %v212_v13, %v200_v23  ;;  %v227_v28 = vadd.f32 %v216_v18, %v201_v24  ;;  %v228_v29 = vadd.f32 %v220_v21, %v202_v25 }
  0x17   : > { %vm229_vm0 = vcmp.gt.f32.partialorder %v225_v26, 0.0  ;;  %v233_v30 = vmul.f32 0.1, %v225_v26  ;;  %vm230_vm1 = vcmp.gt.f32.partialorder %v226_v27, 0.0  ;;  %v234_v31 = vmul.f32 0.1, %v226_v27 }
  0x18   : > { %vm231_vm2 = vcmp.gt.f32.partialorder %v227_v28, 0.0  ;;  %v235_v32 = vmul.f32 0.1, %v227_v28  ;;  %vm232_vm3 = vcmp.gt.f32.partialorder %v228_v29, 0.0  ;;  %v236_v33 = vmul.f32 0.1, %v228_v29 }
  0x19   : > { %v237_v34 = vsel %vm229_vm0, %v225_v26, %v233_v30  ;;  %v238_v35 = vsel %vm230_vm1, %v226_v27, %v234_v31 }
  0x1a   : > { %241 = vst [vmem:[%s170_s25] sm:$0xff] %v237_v34  ;;  %242 = vst [vmem:[%s170_s25 + $0x8] sm:$0xff] %v238_v35  ;;  %v239_v36 = vsel %vm231_vm2, %v227_v28, %v235_v32  ;;  %v240_v37 = vsel %vm232_vm3, %v228_v29, %v236_v33 }
  0x1b   : > { %243 = vst [vmem:[%s170_s25 + $0x10] sm:$0xff] %v239_v36  ;;  %244 = vst [vmem:[%s170_s25 + $0x18] sm:$0xff] %v240_v37 }
  0x1c PF: > { %s13_s12 = sadd.s32 1, %s327_s12  }
  0x1d   : > { %p10_p4 = scmp.ge.s32.totalorder %s13_s12, 6  }
  0x1f   :  { %12 = sbr.rel (!%p10_p4) target bundleno = 1 (0x1), region = 62 }

// kernel: cnn_block_forward.2
= control target key start
LH: loop header
LB: loop body
LE: loop exit
PB: predicated region body
PF: predicated region fallthrough
CT: control target
= control target key end

     0   :  { %s1566_s21 = smov 0   ;;  %s1568_s22 = smov 0   ;;  %s1739_s0 = inlined_call_operand.vmem [shape: bf16[2,18,18,4], index: 0, kind: input, shape index: {}, may-alias: {0,1,2}]   ;;  %s1740_s1 = inlined_call_operand.vmem [shape: bf16[2,18,18,4], index: 1, kind: input, shape index: {}, may-alias: {0,1,2}]   ;;  %s1741_s2 = inlined_call_operand.vmem [shape: bf16[2,18,18,4], index: 2, kind: input, shape index: {}, may-alias: {0,1,2}]   ;;  %s1742_s3 = inlined_call_operand.vmem [shape: bf16[3,3,4,32], index: 3, kind: input, shape index: {}]   ;;  %s1743_s4 = inlined_call_operand.vmem [shape: bf16[2,16,16,32], index: 4, kind: output, shape index: {0}]   ;;  %s1744_s5 = inlined_call_operand.vmem [shape: f32[2,16,1,32], index: 5, kind: output, shape index: {1}]   ;;  %s1745_s6 = inlined_call_operand.vmem [shape: f32[2,16,1,32], index: 6, kind: output, shape index: {2}]  }
   0x1   :  { %s1570_s23 = smov 0   ;;  %s1572_s24 = smov 0  }
   0x2   :  { %s1574_s25 = smov 0  }
   0x3 LB: > { %s29_s26 = sadd.s32 1, %s1519_s23  ;;  %s32_s27 = sadd.s32 1, %s1523_s24  ;;  %s1527_s25 = sphi %s1574_s25, %s17_s25   ;;  %s1523_s24 = sphi %s1572_s24, %s1749_s24   ;;  %s1519_s23 = sphi %s1570_s23, %s1748_s23   ;;  %s1515_s22 = sphi %s1568_s22, %s1747_s22   ;;  %s1511_s21 = sphi %s1566_s21, %s1746_s21  }
   0x4   : > { %p30_p0 = scmp.ge.s32.totalorder %s29_s26, 16  ;;  %p1297_p1 = scmp.ge.s32.totalorder %s1527_s25, 1 }
   0x5   : > { %p303_p2 = scmp.lt.s32.totalorder %s1527_s25, 33 }
   0x6   : > { %s1751_s26 = smov (%p30_p0, %s29_s26), 0  ;;  %s1753_s27 = smov (!%p30_p0, %s32_s27), %s1523_s24 }
   0x7   : > { %p304_p3 = pnand %p1297_p1, %p303_p2  ;;  %p34_p4 = scmp.ge.s32.totalorder %s1753_s27, 2 }
   0x8   : > { %v1306_v0 = vld [vmem:[%s1742_s3 + $0x2] sm:$0x3] (!%p304_p3)  ;;  %vm487_vm0 = vcmask (!%p304_p3), 1041408   ;;  %v1316_v1 = vld [vmem:[%s1742_s3 + $0x8] sm:$0x3] (!%p304_p3)  ;;  %v1529_v2 = vmov (!%p304_p3), 0.0  }
   0x9   : > { %s1755_s27 = smov (%p34_p4, %s1753_s27), 0  ;;  %307 = sbr.rel (%p304_p3) target bundleno = 316 (0x13c), region = 36 }
   0xa   : > { %1353 = vmatprep.subr.bf16.mxu1 (!%p304_p3), %v1529_v2  ;;  %1377 = vmatprep.subr.bf16.mxu0 (!%p304_p3), %v1529_v2  ;;  %v489_v3 = vsel (!%p304_p3), %vm487_vm0, %v1306_v0, 0  ;;  %v712_v4 = vsel (!%p304_p3), %vm487_vm0, %v1316_v1, 0  ;;  %p388_p5 = scmp.lt.s32.totalorder (!%p304_p3), %s1515_s22, 1  ;;  %p390_p6 = scmp.lt.s32.totalorder (!%p304_p3), %s1511_s21, 17  ;;  %vm1530_vm1 = vmmov (!%p304_p3), 0   ;;  %vm483_vm3 = vcmask (!%p304_p3), 31744  }
   0xb   : > { %1354 = vmatpush3.bf16.msra.mxu1 (!%p304_p3), %v489_v3  ;;  %1378 = vmatpush3.bf16.msra.mxu0 (!%p304_p3), %v712_v4  ;;  %s397_s8 = sadd.s32 (!%p304_p3), 1, %s1511_s21  ;;  %s408_s18 = sadd.s32 (!%p304_p3), 2, %s1511_s21  ;;  %v459_v11 = vld [vmem:[%s1742_s3] sm:$0x3] (!%p304_p3)  ;;  %vm470_vm2 = vsmask.f32 (!%p304_p3), 7424 }
   0xc   : > { %1355 = vmatprep.mubr.msk.bf16.mxu1 (!%p304_p3), %vm1530_vm1, %v1529_v2  ;;  %1379 = vmatprep.mubr.msk.bf16.mxu0 (!%p304_p3), %vm1530_vm1, %v1529_v2  ;;  %p400_p7 = scmp.lt.s32.totalorder (!%p304_p3), %s397_s8, 17  ;;  %p411_p8 = scmp.lt.s32.totalorder (!%p304_p3), %s408_s18, 17  ;;  %v1319_v20 = vld [vmem:[%s1742_s3 + $0xa] sm:$0x3] (!%p304_p3)  ;;  %v535_v21 = vsel (!%p304_p3), %vm487_vm0, %v459_v11, 0  ;;  %vm580_vm4 = vcmask (!%p304_p3), 1046528  }
   0xd   : > { %1383 = vmatprep.subr.bf16.mxu0 (!%p304_p3), %v1529_v2  ;;  %1359 = vmatprep.subr.bf16.mxu1 (!%p304_p3), %v1529_v2  ;;  %v766_v25 = vsel (!%p304_p3), %vm487_vm0, %v1319_v20, 0  ;;  %v1311_v27 = vld [vmem:[%s1742_s3 + $0x4] sm:$0x3] (!%p304_p3)  ;;  %v1321_v30 = vld [vmem:[%s1742_s3 + $0xc] sm:$0x3] (!%p304_p3)  ;;  %p425_p9 = scmp.lt.s32.totalorder (!%p304_p3), %s1511_s21, 15 }
   0xe   : > { %v588_v31 = vsel (!%p304_p3), %vm487_vm0, %v1311_v27, 0  ;;  %v825_v33 = vsel (!%p304_p3), %vm487_vm0, %v1321_v30, 0  ;;  %v1313_v36 = vld [vmem:[%s1742_s3 + $0x6] sm:$0x3] (!%p304_p3)  ;;  %v1324_v39 = vld [vmem:[%s1742_s3 + $0xe] sm:$0x3] (!%p304_p3) }
   0xf   : > { %v647_v40 = vsel (!%p304_p3), %vm487_vm0, %v1313_v36, 0  ;;  %v890_v43 = vsel (!%p304_p3), %vm487_vm0, %v1324_v39, 0  ;;  %v1327_v49 = vld [vmem:[%s1742_s3 + $0x10] sm:$0x3] (!%p304_p3)  ;;  %vm997_vm5 = vcmask (!%p304_p3), 257024   ;;  %vm1000_vm6 = vcmask (!%p304_p3), 261120  }
  0x10   : > { %s1757_s22 = smov (!%p388_p5, %s1515_s22), 1  ;;  %s1759_s8 = smov (!%p400_p7, %s397_s8), 17  ;;  %v944_v51 = vsel %vm487_vm0, %v1327_v49, 0  ;;  %vm1010_vm7 = vcmask 253952  }
  0x11   : > { %s391_s9 = scalar_select %p390_p6, %s1511_s21, 17 }
  0x12   : > { %s1624_s10 = smul.u32 54, %s1757_s22  ;;  %s1761_s18 = smov (!%p411_p8, %s408_s18), 17 }
  0x13   : > { %s1437_s11 = smul.u32 3, %s391_s9  ;;  %s1763_s21 = smov (!%p425_p9, %s1511_s21), 15 }
  0x14   : > { %s1439_s14 = smul.u32 3, %s1759_s8 }
  0x15   : > { %s394_s12 = sadd.s32 %s1624_s10, %s1437_s11  ;;  %s1301_s11 = sshll.u32 %s1763_s21, 1 }
  0x16   : > { %s1298_s13 = sshll.u32 %s394_s12, 2  ;;  %s404_s19 = sadd.s32 %s1439_s14, %s1624_s10 }
  0x17   : > { %s396_s17 = scalar_lea.vmem %s1739_s0, %s1298_s13  ;;  %s1299_s20 = sshll.u32 %s404_s19, 2 }
  0x18   : > { %v1483_v5 = vld [vmem:[%s396_s17] sm:$0xff]   ;;  %v1484_v6 = vld [vmem:[%s396_s17 + $0x8] ss:$0 sps:$4 sm:$0x11]   ;;  %s406_s30 = scalar_lea.vmem %s1740_s1, %s1299_s20  ;;  %s1440_s12 = smul.u32 3, %s1761_s18 }
  0x19   : > { %v472_v7 = vshrl.u32 %v1483_v5, 16  ;;  %v474_v8 = vshll.u32 %v1483_v5, 16  ;;  %v479_v9 = vshll.u32 %v1484_v6, 16  ;;  %v1635_v10 = vld [vmem:[%s406_s30] sm:$0xff]   ;;  %v581_v34 = vrot.slane %v1483_v5, 1 }
  0x1a   : > { %v1486_v14 = vld [vmem:[%s406_s30 + $0x8] ss:$0 sps:$4 sm:$0x11]   ;;  %v697_v15 = vshrl.u32 %v1635_v10, 16  ;;  %v699_v16 = vshll.u32 %v1635_v10, 16  ;;  %s415_s13 = sadd.s32 %s1440_s12, %s1624_s10  ;;  %v759_v28 = vrot.slane %v1635_v10, 1 }
  0x1b   : > { %v476_v12 = vrot.slane %v474_v8, 1  ;;  %v481_v13 = vrot.slane %v479_v9, 1  ;;  %v704_v18 = vshll.u32 %v1486_v14, 16  ;;  %s1300_s14 = sshll.u32 %s415_s13, 2  ;;  %v760_v29 = vrot.slane %v1486_v14, 1  ;;  %s1302_s12 = sshll.u32 %s1757_s22, 5 }
  0x1c   : > { %v701_v19 = vrot.slane %v699_v16, 1  ;;  %s417_s17 = scalar_lea.vmem %s1741_s2, %s1300_s14  ;;  %v582_v35 = vrot.slane %v1484_v6, 1  ;;  %s432_s13 = sadd.s32 %s1302_s12, %s1301_s11 }
  0x1d   : > { %v477_v17 = vor.u32 %v476_v12, %v472_v7  ;;  %v706_v23 = vrot.slane %v704_v18, 1  ;;  %v761_v32 = vsel %vm580_vm4, %v759_v28, %v760_v29  ;;  %v1487_v38 = vld [vmem:[%s417_s17] sm:$0xff]   ;;  %v1488_v41 = vld [vmem:[%s417_s17 + $0x8] ss:$0 sps:$4 sm:$0x11]   ;;  %s1303_s14 = sshll.u32 %s432_s13, 2 }
  0x1e   : > { %v702_v24 = vor.u32 %v701_v19, %v697_v15  ;;  %v583_v37 = vsel %vm580_vm4, %v581_v34, %v582_v35  ;;  %v877_v42 = vshll.u32 %v1487_v38, 16  ;;  %v875_v44 = vshrl.u32 %v1487_v38, 16  ;;  %s434_s17 = scalar_lea.vmem %s1743_s4, %s1303_s14  ;;  %s1304_s10 = sshll.u32 %s1757_s22, 4 }
  0x1f   : > { %v482_v22 = vsel %vm470_vm2, %v477_v17, %v481_v13  ;;  %v882_v46 = vshll.u32 %v1488_v41, 16  ;;  %v937_v52 = vrot.slane %v1487_v38, 1  ;;  %v938_v53 = vrot.slane %v1488_v41, 1  ;;  %s443_s18 = sadd.s32 %s1304_s10, %s1763_s21 }
  0x20   : > { %1356 = vmatmul.mubr.msk.bf16.vlgmr.msra.gmra.mrb[0].mxu1 %vm483_vm3, %v482_v22  ;;  %v707_v26 = vsel %vm470_vm2, %v702_v24, %v706_v23  ;;  %v879_v45 = vrot.slane %v877_v42, 1  ;;  %s444_s28 = scalar_lea.vmem %s1744_s5, %s443_s18  ;;  %s454_s7 = scalar_lea.vmem %s1745_s6, %s443_s18 }
  0x21   : > { %1360 = vmatpush3.bf16.msra.mxu1 %v535_v21  ;;  %1361 = vmatprep.mubr.msk.bf16.mxu1 %vm1530_vm1, %v1529_v2  ;;  %v884_v48 = vrot.slane %v882_v46, 1  ;;  %v939_v54 = vsel %vm580_vm4, %v937_v52, %v938_v53 }
  0x22   : > { %1365 = vmatprep.subr.bf16.mxu1 %v1529_v2  ;;  %1380 = vmatmul.mubr.msk.bf16.vlgmr.msra.gmra.mrb[0].mxu0 %vm483_vm3, %v707_v26  ;;  %v880_v47 = vor.u32 %v879_v45, %v875_v44 }
  0x23   : > { %1384 = vmatpush3.bf16.msra.mxu0 %v766_v25  ;;  %1385 = vmatprep.mubr.msk.bf16.mxu0 %vm1530_vm1, %v1529_v2 }
  0x24   : > { %1389 = vmatprep.subr.bf16.mxu0 %v1529_v2  ;;  %v885_v50 = vsel %vm470_vm2, %v880_v47, %v884_v48 }
  0x2c   : > { %1362 = vmatmul.mubr.msk.bf16.vlgmr.msra.gmra.mrb[0].mxu1 %vm483_vm3, %v1483_v5 }
  0x2d   : > { %1366 = vmatpush3.bf16.msra.mxu1 %v588_v31  ;;  %1367 = vmatprep.mubr.msk.bf16.mxu1 %vm1530_vm1, %v1529_v2 }
  0x2e   : > { %1371 = vmatprep.subr.bf16.mxu1 %v1529_v2  ;;  %1386 = vmatmul.mubr.msk.bf16.vlgmr.msra.gmra.mrb[0].mxu0 %vm483_vm3, %v761_v32 }
  0x2f   : > { %1390 = vmatpush3.bf16.msra.mxu0 %v825_v33  ;;  %1391 = vmatprep.mubr.msk.bf16.mxu0 %vm1530_vm1, %v1529_v2 }
  0x30   : > { %1395 = vmatprep.subr.bf16.mxu0 %v1529_v2 }
  0x38   : > { %1368 = vmatmul.mubr.msk.bf16.vlgmr.msra.gmra.mrb[0].mxu1 %vm483_vm3, %v583_v37 }
  0x39   : > { %1372 = vmatpush3.bf16.msra.mxu1 %v647_v40  ;;  %1373 = vmatprep.mubr.msk.bf16.mxu1 %vm1530_vm1, %v1529_v2 }
  0x3a   : > { %1392 = vmatmul.mubr.msk.bf16.vlgmr.msra.gmra.mrb[0].mxu0 %vm483_vm3, %v1487_v38 }
  0x3b   : > { %1396 = vmatpush3.bf16.msra.mxu0 %v890_v43  ;;  %1397 = vmatprep.mubr.msk.bf16.mxu0 %vm1530_vm1, %v1529_v2 }
  0x3c   : > { %1401 = vmatprep.subr.bf16.mxu0 %v1529_v2 }
  0x44   : > { %1374 = vmatmul.mubr.msk.bf16.vlgmr.msra.gmra.mrb[0].mxu1 %vm483_vm3, %v1635_v10 }
  0x46   : > { %1398 = vmatmul.mubr.msk.bf16.vlgmr.msra.gmra.mrb[0].mxu0 %vm483_vm3, %v885_v50 }
  0x47   : > { %1402 = vmatpush3.bf16.msra.mxu0 %v944_v51  ;;  %1403 = vmatprep.mubr.msk.bf16.mxu0 %vm1530_vm1, %v1529_v2 }
  0x52   : > { %1404 = vmatmul.mubr.msk.bf16.vlgmr.msra.gmra.mrb[0].mxu0 %vm483_vm3, %v939_v54 }
 0x117   : > { %v683_v55 = vpop.f32.mrb[0].mxu1 }
 0x118   : > { %v1375_v56 = vpop.f32.mrb[1].mxu1 }
 0x119   : > { %v686_v57 = vpop.f32.mrb[2].mxu1 }
 0x11a   : > { %v1376_v58 = vpop.f32.mrb[3].mxu1 }
 0x125   : > { %v980_v59 = vpop.f32.mrb[0].mxu0 }
 0x126   : > { %v1407_v60 = vadd.f32 %v980_v59, %v683_v55  ;;  %v1405_v61 = vpop.f32.mrb[1].mxu0 }
 0x127   : > { %v983_v62 = vpop.f32.mrb[2].mxu0 }
 0x128   : > { %v1333_v63 = vpack.c.bf16 %v1407_v60, %v1407_v60  ;;  %v1012_v0 = vmul.f32 %v1407_v60, %v1407_v60  ;;  %v1408_v1 = vadd.f32 %v983_v62, %v686_v57  ;;  %v1406_v2 = vpop.f32.mrb[3].mxu0  ;;  %v1001_v3 = vsel %vm1000_vm6, %v1407_v60, 0.0 }
 0x12a   : > { %998 = vst.msk [vmem:[%s434_s17] sm:$0xf] %vm997_vm5, %v1333_v63  ;;  %v1334_v4 = vpack.c.bf16 %v1408_v1, %v1408_v1  ;;  %v1002_v5 = vsel %vm1000_vm6, %v1408_v1, 0.0  ;;  %v1013_v6 = vmul.f32 %v1408_v1, %v1408_v1  ;;  %v1014_v8 = vsel %vm1000_vm6, %v1012_v0, 0.0 }
 0x12b   : > { %v1003_v7 = vadd.f32 %v1002_v5, %v1001_v3 }
 0x12c   : > { %999 = vst.msk [vmem:[%s434_s17 + $0x4] sm:$0xf] %vm997_vm5, %v1334_v4  ;;  %v1015_v9 = vsel %vm1000_vm6, %v1013_v6, 0.0 }
 0x12d   : > { %v1004_v10 = vrot.slane %v1003_v7, 4  ;;  %v1016_v11 = vadd.f32 %v1015_v9, %v1014_v8 }
 0x12f   : > { %v1005_v12 = vadd.f32 %v1004_v10, %v1003_v7  ;;  %v1017_v13 = vrot.slane %v1016_v11, 4 }
 0x131   : > { %v1006_v14 = vrot.slane %v1005_v12, 2  ;;  %v1018_v15 = vadd.f32 %v1017_v13, %v1016_v11 }
 0x133   : > { %v1007_v16 = vadd.f32 %v1006_v14, %v1005_v12  ;;  %v1019_v17 = vrot.slane %v1018_v15, 2 }
 0x135   : > { %v1008_v18 = vrot.slane %v1007_v16, 1  ;;  %v1020_v19 = vadd.f32 %v1019_v17, %v1018_v15 }
 0x137   : > { %v1009_v20 = vadd.f32 %v1008_v18, %v1007_v16  ;;  %v1021_v21 = vrot.slane %v1020_v19, 1 }
 0x139   : > { %1011 = vst.msk [vmem:[%s444_s28] sm:$0x1] %vm1010_vm7, %v1009_v20  ;;  %v1022_v22 = vadd.f32 %v1021_v21, %v1020_v19 }
 0x13b   : > { %1023 = vst.msk [vmem:[%s454_s7] sm:$0x1] %vm1010_vm7, %v1022_v22 }
 0x13c PF: > { %s17_s25 = sadd.s32 1, %s1527_s25   ;;  %s1746_s21 = smov %s1519_s23 }
 0x13d   : > { %p14_p10 = scmp.ge.s32.totalorder %s17_s25, 34   ;;  %s1747_s22 = smov %s1523_s24 }
 0x13e   : > { %s1748_s23 = smov %s1751_s26  ;;  %s1749_s24 = smov %s1755_s27 }
 0x13f   :  { %16 = sbr.rel (!%p14_p10) target bundleno = 3 (0x3), region = 107 }

</bundles_post_ra>
